<compile_context>
chip_gen: v7x
topology: tpu7x:2x2x1
jax: 0.10.0
libtpu: 0.0.40
codegen_flags: <defaults>
</compile_context>

<pallas_src>
import jax
import jax.numpy as jnp
from jax.experimental import pallas as pl
from jax.experimental.pallas import tpu as pltpu


def _round_up(a, m):
    return (a + m - 1) // m * m


def _sigmoid(v):
    # sigmoid(x) == 0.5 * tanh(0.5 * x) + 0.5 : one EUP op, no divide.
    return 0.5 * jnp.tanh(0.5 * v) + 0.5


def make_fnn_kernel(hidden, num_inputs, compute_dtype=jnp.float32):
    """Fused kernel for the packed-slab layout (num_outputs == 1)."""
    H, NIN = hidden, num_inputs
    Hp = _round_up(H, 8)          # padded hidden dim (tile-aligned rows)
    # slab column offsets (all static); w2^T first so it is lane-0 aligned.
    C_W2 = 0                      # w2^T : (Hp, Hp) block, zero-padded
    C_W1 = Hp                     # w1^T : (Hp, NIN), pad rows zero
    C_B1 = Hp + NIN               # b1   : (Hp, 1),  pad rows zero
    C_B2 = Hp + NIN + 1           # b2   : (Hp, 1),  pad rows zero
    C_W3 = Hp + NIN + 2           # w3   : (Hp, 1),  pad rows zero
    C_B3 = Hp + NIN + 3           # b3   : scalar at row 0

    def kernel(xT_ref, slab_ref, o_ref):
        xT = xT_ref[...].astype(compute_dtype)            # (NIN, TB), batch on lanes

        # ---- Layer 1: K=NIN is tiny -> VPU broadcast-FMAs, skip the MXU ----
        h = slab_ref[:, C_B1:C_B1 + 1].astype(compute_dtype)        # (Hp, 1)
        for k in range(NIN):                                         # static unroll
            w_col = slab_ref[:, C_W1 + k:C_W1 + k + 1].astype(compute_dtype)
            h = h + w_col * xT[k:k + 1, :]
        h = _sigmoid(h)                                   # (Hp, TB); pad rows -> 0.5 (harmless)

        # ---- Layer 2: full-tile (Hp, Hp) @ (Hp, TB) -> one MXU pass ----
        w2 = slab_ref[:, C_W2:C_W2 + Hp].astype(compute_dtype)
        h2 = (jnp.dot(w2, h, preferred_element_type=jnp.float32)
              + slab_ref[:, C_B2:C_B2 + 1]).astype(compute_dtype)
        h2 = _sigmoid(h2)                                 # pad rows -> 0.5, killed by zero w3

        # ---- Layer 3: N=1 -> VPU multiply + XLU sublane reduce, skip the MXU ----
        w3 = slab_ref[:, C_W3:C_W3 + 1].astype(compute_dtype)
        z = jnp.sum((w3 * h2).astype(jnp.float32), axis=0, keepdims=True)
        z = z + slab_ref[0:1, C_B3:C_B3 + 1]              # (1, TB)
        o_ref[...] = _sigmoid(z).astype(o_ref.dtype)

    return kernel


def pack_params(params, hidden, num_inputs):
    """Pack (w1,b1,w2,b2,w3,b3) into one (round_up(H,8), 128) f32 slab.

    Zero padding in rows H..Hp-1 (and w2 cols H..Hp-1) is load-bearing: padded
    activation rows become sigmoid(0)=0.5 but are multiplied by zero weights.
    """
    w1, b1, w2, b2, w3, b3 = params   # (NIN,H),(1,H),(H,H),(1,H),(H,1),(1,1)
    H, NIN = hidden, num_inputs
    assert w3.shape == (H, 1) and b3.shape == (1, 1), "kernel assumes num_outputs == 1"
    Hp = _round_up(H, 8)
    assert Hp + NIN + 4 <= 128, "packed slab exceeds one 128-lane tile"
    slab = jnp.zeros((Hp, 128), jnp.float32)
    slab = slab.at[0:H, 0:H].set(w2.T)                              # w2^T (lane-0 aligned)
    slab = slab.at[0:H, Hp:Hp + NIN].set(w1.T)                      # w1^T
    slab = slab.at[0:H, Hp + NIN:Hp + NIN + 1].set(b1.T)            # b1
    slab = slab.at[0:H, Hp + NIN + 1:Hp + NIN + 2].set(b2.T)        # b2
    slab = slab.at[0:H, Hp + NIN + 2:Hp + NIN + 3].set(w3)          # w3 (column)
    slab = slab.at[0:1, Hp + NIN + 3:Hp + NIN + 4].set(b3)          # b3 (scalar)
    return slab


def fnn_forward_xt(xT, slab, *, hidden=20, num_inputs=4, block_b=8192,
                   compute_dtype=jnp.float32):
    """Forward pass on lane-major input. xT: (num_inputs, B) f32 -> (B,) f32.

    Prefer this entry point when the producer can emit x already transposed,
    avoiding an extra HBM round trip for the transpose.
    """
    NIN, B = xT.shape
    assert NIN == num_inputs

    # Pick the batch tile: big enough to amortise the ~0.35 us per-grid-step
    # overhead, but keep >=2 grid steps when the batch spans >1 lane tile so
    # "parallel" can shard across v7x's two TensorCores.
    Bp0 = _round_up(B, 128)
    tb = min(block_b, Bp0)
    if Bp0 >= 256:
        tb = min(tb, _round_up(Bp0 // 2, 128))
    tb = max(tb, 128)
    Bp = _round_up(Bp0, tb)

    if Bp != B:
        xTp = jnp.zeros((NIN, Bp), jnp.float32).at[:, :B].set(xT)
    else:
        xTp = xT.astype(jnp.float32)

    H = hidden
    cost = pl.CostEstimate(
        flops=2 * B * (NIN * H + H * H + H),
        transcendentals=B * (2 * H + 1),
        bytes_accessed=int(xTp.size * 4 + slab.size * 4 + Bp * 4),
    )

    out = pl.pallas_call(
        make_fnn_kernel(hidden, num_inputs, compute_dtype),
        out_shape=jax.ShapeDtypeStruct((1, Bp), jnp.float32),
        grid=(Bp // tb,),
        in_specs=[
            pl.BlockSpec((NIN, tb), lambda i: (0, i)),       # batch tile (pipelined)
            pl.BlockSpec(slab.shape, lambda i: (0, 0)),      # weight slab: VMEM-resident
        ],
        out_specs=pl.BlockSpec((1, tb), lambda i: (0, i)),   # lane-dense output store
        compiler_params=pltpu.CompilerParams(
            dimension_semantics=("parallel",)),               # shard batch over TCs (v7x)
        cost_estimate=cost,
    )(xTp, slab)
    # torch `.squeeze()` drops the size-1 output dim -> (B,). (torch would also
    # drop the batch dim when B == 1; we keep (B,) for downstream shape safety.)
    return out[0, :B]


def fnn_forward(x, slab, *, hidden=20, num_inputs=4, block_b=8192,
                compute_dtype=jnp.float32):
    """Fused forward pass. x: (B, num_inputs) f32 -> (B,) f32."""
    # NOTE: for large B, prefer fnn_forward_xt with a producer that already
    # emits (num_inputs, B) to skip this transpose's HBM round trip.
    return fnn_forward_xt(x.T, slab, hidden=hidden, num_inputs=num_inputs,
                          block_b=block_b, compute_dtype=compute_dtype)


def init_params(key, num_inputs=4, num_outputs=1, hidden_layers=20):
    """Deterministic init matching nn.Linear's U(-1/sqrt(fan_in), 1/sqrt(fan_in))."""
    def linear(k, fan_in, fan_out):
        kw, kb = jax.random.split(k)
        bound = 1.0 / jnp.sqrt(fan_in)
        w = jax.random.uniform(kw, (fan_in, fan_out), jnp.float32, -bound, bound)
        b = jax.random.uniform(kb, (1, fan_out), jnp.float32, -bound, bound)
        return w, b

    k1, k2, k3 = jax.random.split(key, 3)
    w1, b1 = linear(k1, num_inputs, hidden_layers)
    w2, b2 = linear(k2, hidden_layers, hidden_layers)
    w3, b3 = linear(k3, hidden_layers, num_outputs)
    return (w1, b1, w2, b2, w3, b3)


def fnn_reference(x, params):
    w1, b1, w2, b2, w3, b3 = params
    h = jax.nn.sigmoid(x @ w1 + b1)
    h = jax.nn.sigmoid(h @ w2 + b2)
    h = jax.nn.sigmoid(h @ w3 + b3)
    return jnp.squeeze(h, axis=-1)


if __name__ == "__main__":
    key = jax.random.PRNGKey(0)
    kx, kx2, kp = jax.random.split(key, 3)

    num_inputs, num_outputs, hidden = 4, 1, 20
    params = init_params(kp, num_inputs, num_outputs, hidden)
    slab = pack_params(params, hidden, num_inputs)

    # Small batch (single grid step).
    B1 = 8
    x1 = jax.random.normal(kx, (B1, num_inputs), jnp.float32)
    y1 = jax.block_until_ready(fnn_forward(x1, slab, hidden=hidden, num_inputs=num_inputs))
    y1_ref = fnn_reference(x1, params)
    assert y1.shape == (B1,), y1.shape
    assert jnp.allclose(y1, y1_ref, atol=1e-5, rtol=1e-5), (y1, y1_ref)

    # Larger ragged batch (exercises the >=2-step grid / padded-tail path).
    B2 = 333
    x2 = jax.random.normal(kx2, (B2, num_inputs), jnp.float32)
    y2 = jax.block_until_ready(fnn_forward(x2, slab, hidden=hidden, num_inputs=num_inputs))
    y2_ref = fnn_reference(x2, params)
    assert y2.shape == (B2,), y2.shape
    assert jnp.allclose(y2, y2_ref, atol=1e-5, rtol=1e-5)

    print("KERNEL_OK")
</pallas_src>

<mosaic_0001>
module attributes {stable_mosaic.version = 11 : i64} {
  func.func @kernel(%arg0: i32, %arg1: memref<4x128xf32, #tpu.memory_space<vmem>>, %arg2: memref<24x128xf32, #tpu.memory_space<vmem>>, %arg3: memref<1x128xf32, #tpu.memory_space<vmem>>) attributes {dimension_semantics = [#tpu.dimension_semantics<parallel>], iteration_bounds = array<i64: 1>, scalar_prefetch = 0 : i64, scratch_operands = 0 : i64, tpu.core_type = #tpu.core_type<tc>, window_params = [{transform_indices = @transform_0, window_bounds = array<i64: 4, 128>}, {pipeline_mode = #tpu.pipeline_mode<synchronous>, transform_indices = @transform_1, window_bounds = array<i64: 24, 128>}, {transform_indices = @transform_2, window_bounds = array<i64: 1, 128>}]} {
    %c0 = arith.constant 0 : index
    %c0_0 = arith.constant 0 : index
    %0 = vector.load %arg1[%c0, %c0_0] : memref<4x128xf32, #tpu.memory_space<vmem>>, vector<4x128xf32>
    %c0_1 = arith.constant 0 : index
    %c28 = arith.constant 28 : index
    %1 = vector.load %arg2[%c0_1, %c28] : memref<24x128xf32, #tpu.memory_space<vmem>>, vector<24x1xf32>
    %c0_2 = arith.constant 0 : index
    %c24 = arith.constant 24 : index
    %2 = vector.load %arg2[%c0_2, %c24] : memref<24x128xf32, #tpu.memory_space<vmem>>, vector<24x1xf32>
    %3 = vector.extract_strided_slice %0 {offsets = [0, 0], sizes = [1, 128], strides = [1, 1]} : vector<4x128xf32> to vector<1x128xf32>
    %4 = vector.broadcast %2 : vector<24x1xf32> to vector<24x128xf32>
    %5 = vector.broadcast %3 : vector<1x128xf32> to vector<24x128xf32>
    %6 = arith.mulf %4, %5 : vector<24x128xf32>
    %7 = vector.broadcast %1 : vector<24x1xf32> to vector<24x128xf32>
    %8 = arith.addf %7, %6 : vector<24x128xf32>
    %c0_3 = arith.constant 0 : index
    %c25 = arith.constant 25 : index
    %9 = vector.load %arg2[%c0_3, %c25] : memref<24x128xf32, #tpu.memory_space<vmem>>, vector<24x1xf32>
    %10 = vector.extract_strided_slice %0 {offsets = [1, 0], sizes = [1, 128], strides = [1, 1]} : vector<4x128xf32> to vector<1x128xf32>
    %11 = vector.broadcast %9 : vector<24x1xf32> to vector<24x128xf32>
    %12 = vector.broadcast %10 : vector<1x128xf32> to vector<24x128xf32>
    %13 = arith.mulf %11, %12 : vector<24x128xf32>
    %14 = arith.addf %8, %13 : vector<24x128xf32>
    %c0_4 = arith.constant 0 : index
    %c26 = arith.constant 26 : index
    %15 = vector.load %arg2[%c0_4, %c26] : memref<24x128xf32, #tpu.memory_space<vmem>>, vector<24x1xf32>
    %16 = vector.extract_strided_slice %0 {offsets = [2, 0], sizes = [1, 128], strides = [1, 1]} : vector<4x128xf32> to vector<1x128xf32>
    %17 = vector.broadcast %15 : vector<24x1xf32> to vector<24x128xf32>
    %18 = vector.broadcast %16 : vector<1x128xf32> to vector<24x128xf32>
    %19 = arith.mulf %17, %18 : vector<24x128xf32>
    %20 = arith.addf %14, %19 : vector<24x128xf32>
    %c0_5 = arith.constant 0 : index
    %c27 = arith.constant 27 : index
    %21 = vector.load %arg2[%c0_5, %c27] : memref<24x128xf32, #tpu.memory_space<vmem>>, vector<24x1xf32>
    %22 = vector.extract_strided_slice %0 {offsets = [3, 0], sizes = [1, 128], strides = [1, 1]} : vector<4x128xf32> to vector<1x128xf32>
    %23 = vector.broadcast %21 : vector<24x1xf32> to vector<24x128xf32>
    %24 = vector.broadcast %22 : vector<1x128xf32> to vector<24x128xf32>
    %25 = arith.mulf %23, %24 : vector<24x128xf32>
    %26 = arith.addf %20, %25 : vector<24x128xf32>
    %cst = arith.constant 5.000000e-01 : f32
    %27 = vector.broadcast %cst : f32 to vector<24x128xf32>
    %28 = arith.mulf %27, %26 : vector<24x128xf32>
    %29 = math.tanh %28 : vector<24x128xf32>
    %cst_6 = arith.constant 5.000000e-01 : f32
    %30 = vector.broadcast %cst_6 : f32 to vector<24x128xf32>
    %31 = arith.mulf %30, %29 : vector<24x128xf32>
    %cst_7 = arith.constant 5.000000e-01 : f32
    %32 = vector.broadcast %cst_7 : f32 to vector<24x128xf32>
    %33 = arith.addf %31, %32 : vector<24x128xf32>
    %c0_8 = arith.constant 0 : index
    %c0_9 = arith.constant 0 : index
    %34 = vector.load %arg2[%c0_8, %c0_9] : memref<24x128xf32, #tpu.memory_space<vmem>>, vector<24x24xf32>
    %cst_10 = arith.constant dense<0.000000e+00> : vector<24x128xf32>
    %35 = tpu.matmul %34, %33, %cst_10 {dimension_numbers = #tpu.dot_dimension_numbers<[1], [0], [0], [1], [0, 0, 1, 1], [], []>} : vector<24x24xf32>, vector<24x128xf32>, vector<24x128xf32> -> vector<24x128xf32>
    %c0_11 = arith.constant 0 : index
    %c29 = arith.constant 29 : index
    %36 = vector.load %arg2[%c0_11, %c29] : memref<24x128xf32, #tpu.memory_space<vmem>>, vector<24x1xf32>
    %37 = vector.broadcast %36 : vector<24x1xf32> to vector<24x128xf32>
    %38 = arith.addf %35, %37 : vector<24x128xf32>
    %cst_12 = arith.constant 5.000000e-01 : f32
    %39 = vector.broadcast %cst_12 : f32 to vector<24x128xf32>
    %40 = arith.mulf %39, %38 : vector<24x128xf32>
    %41 = math.tanh %40 : vector<24x128xf32>
    %cst_13 = arith.constant 5.000000e-01 : f32
    %42 = vector.broadcast %cst_13 : f32 to vector<24x128xf32>
    %43 = arith.mulf %42, %41 : vector<24x128xf32>
    %cst_14 = arith.constant 5.000000e-01 : f32
    %44 = vector.broadcast %cst_14 : f32 to vector<24x128xf32>
    %45 = arith.addf %43, %44 : vector<24x128xf32>
    %c0_15 = arith.constant 0 : index
    %c30 = arith.constant 30 : index
    %46 = vector.load %arg2[%c0_15, %c30] : memref<24x128xf32, #tpu.memory_space<vmem>>, vector<24x1xf32>
    %47 = vector.broadcast %46 : vector<24x1xf32> to vector<24x128xf32>
    %48 = arith.mulf %47, %45 : vector<24x128xf32>
    %cst_16 = arith.constant dense<0.000000e+00> : vector<128xf32>
    %49 = vector.multi_reduction <add>, %48, %cst_16 [0] : vector<24x128xf32> to vector<128xf32>
    %50 = vector.shape_cast %49 : vector<128xf32> to vector<1x128xf32>
    %c0_17 = arith.constant 0 : index
    %c31 = arith.constant 31 : index
    %51 = vector.load %arg2[%c0_17, %c31] : memref<24x128xf32, #tpu.memory_space<vmem>>, vector<1x1xf32>
    %52 = vector.broadcast %51 : vector<1x1xf32> to vector<1x128xf32>
    %53 = arith.addf %50, %52 : vector<1x128xf32>
    %cst_18 = arith.constant 5.000000e-01 : f32
    %54 = vector.broadcast %cst_18 : f32 to vector<1x128xf32>
    %55 = arith.mulf %54, %53 : vector<1x128xf32>
    %56 = math.tanh %55 : vector<1x128xf32>
    %cst_19 = arith.constant 5.000000e-01 : f32
    %57 = vector.broadcast %cst_19 : f32 to vector<1x128xf32>
    %58 = arith.mulf %57, %56 : vector<1x128xf32>
    %cst_20 = arith.constant 5.000000e-01 : f32
    %59 = vector.broadcast %cst_20 : f32 to vector<1x128xf32>
    %60 = arith.addf %58, %59 : vector<1x128xf32>
    %c0_21 = arith.constant 0 : index
    %c0_22 = arith.constant 0 : index
    %61 = vector.load %arg3[%c0_21, %c0_22] : memref<1x128xf32, #tpu.memory_space<vmem>>, vector<1x128xf32>
    tpu.vector_store %arg3[%c0_21, %c0_22], %60 {strides = array<i32>} : memref<1x128xf32, #tpu.memory_space<vmem>>, vector<1x128xf32>,
    return
  }
  func.func @transform_0(%arg0: i32) -> (i32, i32) {
    %c0_i32 = arith.constant 0 : i32
    %c0_i32_0 = arith.constant 0 : i32
    return %c0_i32, %arg0 : i32, i32
  }
  func.func @transform_1(%arg0: i32) -> (i32, i32) {
    %c0_i32 = arith.constant 0 : i32
    %c0_i32_0 = arith.constant 0 : i32
    %c0_i32_1 = arith.constant 0 : i32
    return %c0_i32, %c0_i32_0 : i32, i32
  }
  func.func @transform_2(%arg0: i32) -> (i32, i32) {
    %c0_i32 = arith.constant 0 : i32
    %c0_i32_0 = arith.constant 0 : i32
    return %c0_i32, %arg0 : i32, i32
  }
}

</mosaic_0001>

<bundles_post_ra>
// kernel: tpu_custom_call.1
= control target key start
LH: loop header
LB: loop body
LE: loop exit
PB: predicated region body
PF: predicated region fallthrough
CT: control target
= control target key end

     0   :  { %7 = vsyncpa [#allocation3], 0  ;;  %s583_s0 = inlined_call_operand.hbm [shape: f32[4,128], index: 0, kind: input, shape index: {}]   ;;  %s584_s1 = inlined_call_operand.hbm [shape: f32[24,128], index: 1, kind: input, shape index: {}]   ;;  %s585_s2 = inlined_call_operand.hbm [shape: f32[1,128], index: 2, kind: output, shape index: {}]  }
   0x1   :  { %8 = vsyncpa [#allocation6], 0 }
   0x2   :  { %9 = vsyncpa [#allocation4], 0  ;;  %s471_s9 = smov [#allocation2]   ;;  %s472_s11 = smov [#allocation5]  }
   0x3   :  { %s16_s10 = sshll.u32 %s471_s9, 4  ;;  %s25_s12 = sshll.u32 %s472_s11, 4  ;;  %s17_s10 = int_to_ptr.vmem [resolvable:$true] %s16_s10  ;;  %s502_s12 = int_to_ptr.vmem [resolvable:$true] %s25_s12 }
   0x4   :  { %s399_s15 = scalar_lea.hbm %s583_s0, 64 }
   0x5   :  { %p400_p0 = scmp.ne.s32.totalorder %s583_s0, %s399_s15  ;;  %p403_p1 = scmp.lt.u32.totalorder %s399_s15, %s583_s0 }
   0x7   :  { %p405_p2 = pnand %p403_p1, %p400_p0 }
   0x9   :  { %408 = shalt.err (!%p405_p2)
}
   0xa   :  { %s409_s20 = scalar_lea.vmem %s17_s10, 64  ;;  %p414_p4 = scmp.lt.s32.totalorder %s17_s10, %s17_s10 }
   0xb   :  { %p410_p3 = scmp.ne.s32.totalorder %s17_s10, %s409_s20  ;;  %p415_p5 = scmp.lt.s32.totalorder %s409_s20, %s409_s20 }
   0xd   :  { %p416_p6 = por %p415_p5, %p414_p4 }
   0xf   :  { %p417_p7 = pnand %p416_p6, %p410_p3 }
  0x11   :  { %420 = shalt.err (!%p417_p7)
}
  0x12   :  { %19 = dma.hbm_to_vmem [thread:$0]  %s583_s0, 64, %s17_s10, [#allocation3]  }
  0x13   :  { %s421_s25 = scalar_lea.hbm %s584_s1, 384 }
  0x14   :  { %p422_p8 = scmp.ne.s32.totalorder %s584_s1, %s421_s25  ;;  %p425_p9 = scmp.lt.u32.totalorder %s421_s25, %s584_s1 }
  0x16   :  { %p427_p10 = pnand %p425_p9, %p422_p8 }
  0x18   :  { %430 = shalt.err (!%p427_p10)
}
  0x19   :  { %s431_s30 = scalar_lea.vmem %s502_s12, 384  ;;  %p436_p12 = scmp.lt.s32.totalorder %s502_s12, %s502_s12 }
  0x1a   :  { %p432_p11 = scmp.ne.s32.totalorder %s502_s12, %s431_s30  ;;  %p437_p13 = scmp.lt.s32.totalorder %s431_s30, %s431_s30 }
  0x1c   :  { %p438_p0 = por %p437_p13, %p436_p12 }
  0x1e   :  { %p439_p1 = pnand %p438_p0, %p432_p11 }
  0x20   :  { %442 = shalt.err (!%p439_p1)
}
  0x21   :  { %s473_s0 = smov 128   ;;  %s474_s3 = smov 8  }
  0x22   :  { %31 = dma.hbm_to_vmem [thread:$0]  %s584_s1, 384, %s502_s12, [#allocation6], %s473_s0, %s473_s0, %s474_s3  }
  0x23   :  { %465 = dma.done.wait [#allocation3], 64  }
  0x24   :  { %466 = vsyncadd [#allocation3], 4294967232 }
  0x25   :  { %467 = dma.done.wait [#allocation6], 384  }
  0x26   :  { %468 = vsyncadd [#allocation6], 4294966912  ;;  %v475_v0 = vmov 28   ;;  %v476_v1 = vmov 24   ;;  %v533_v2 = vld [vmem:[#allocation5] sm:$0xff]  ;;  %v537_v3 = vld [vmem:[#allocation5 + $0x8] sm:$0xff]  ;;  %v57_v14 = vlaneseq }
  0x27   :  { %367 = vset.pattern.permute.xlu1 %v475_v0  ;;  %366 = vset.pattern.permute.xlu0 %v476_v1  ;;  %v477_v4 = vmov 25   ;;  %v478_v5 = vmov 26   ;;  %v545_v6 = vld [vmem:[#allocation5 + $0x10] sm:$0xff]  ;;  %v479_v7 = vmov 27   ;;  %v480_v8 = vmov 0.0|0.0   ;;  %s486_s1 = smov [#allocation7]  }
  0x28   :  { %65 = vperm.xlu1 %367, %v533_v2   ;;  %44 = vperm.xlu0 %366, %v533_v2   ;;  %vm481_vm0 = vmmov 0   ;;  %v482_v9 = vmov 0.0   ;;  %v483_v10 = vmov 29   ;;  %v484_v11 = vmov 30   ;;  %v291_v13 = vld [vmem:[#allocation5] sm:$0x1] }
  0x29   :  { %343 = vmatprep.subr.bf16.mxu0 %v480_v8  ;;  %346 = vmatprep.subr.bf16.mxu1 %v480_v8  ;;  %v485_v12 = vmov 31   ;;  %v58_v17 = vshrl.u32 %v57_v14, 7  ;;  %v38_v22 = vld [vmem:[#allocation2] sm:$0xf]  ;;  %vm169_vm1 = vcmask 195584   ;;  %s309_s6 = sshll.u32 %s486_s1, 4  ;;  %s310_s6 = int_to_ptr.vmem [resolvable:$true] %s309_s6 }
  0x2a   :  { %334 = vmatprep.mubr.msk.f32.mxu0 %vm481_vm0, %v482_v9  ;;  %337 = vmatprep.mubr.msk.f32.mxu1 %vm481_vm0, %v482_v9  ;;  %s443_s7 = scalar_lea.vmem %s310_s6, 16  ;;  %s447_s8 = scalar_lea.vmem %s310_s6, 32 }
  0x2b   :  { %v59_v20 = vsub.s32 0, %v58_v17  ;;  %v93_v21 = vsub.s32 1, %v58_v17  ;;  %v115_v23 = vsub.s32 2, %v58_v17  ;;  %v137_v30 = vsub.s32 3, %v58_v17  ;;  %p444_p2 = scmp.ne.s32.totalorder %s310_s6, %s443_s7  ;;  %p448_p3 = scmp.lt.s32.totalorder %s310_s6, %s310_s6 }
  0x2c   :  { %69 = vperm.xlu1 %367, %v537_v3   ;;  %49 = vperm.xlu0 %366, %v537_v3   ;;  %p449_p4 = scmp.lt.s32.totalorder %s447_s8, %s443_s7 }
  0x2d   :  { %v60_v26 = vrot.slane %v38_v22, %v59_v20  ;;  %v94_v27 = vrot.slane %v38_v22, %v93_v21  ;;  %v116_v29 = vrot.slane %v38_v22, %v115_v23  ;;  %v138_v36 = vrot.slane %v38_v22, %v137_v30 }
  0x2e   :  { %p450_p5 = por %p449_p4, %p448_p3 }
  0x30   :  { %369 = vset.pattern.permute.xlu1 %v477_v4  ;;  %368 = vset.pattern.permute.xlu0 %v477_v4  ;;  %p451_p6 = pnand %p450_p5, %p444_p2 }
  0x31   :  { %84 = vperm.xlu1 %369, %v537_v3   ;;  %80 = vperm.xlu0 %368, %v533_v2  }
  0x35   :  { %370 = vset.pattern.permute.xlu1 %v478_v5  ;;  %371 = vset.pattern.permute.xlu0 %v478_v5 }
  0x36   :  { %102 = vperm.xlu1 %370, %v533_v2   ;;  %106 = vperm.xlu0 %371, %v537_v3  }
  0x3a   :  { %372 = vset.pattern.permute.xlu1 %v476_v1  ;;  %374 = vset.pattern.permute.xlu0 %v479_v7 }
  0x3b   :  { %54 = vperm.xlu1 %372, %v545_v6   ;;  %128 = vperm.xlu0 %374, %v537_v3  }
  0x3f   :  { %373 = vset.pattern.permute.xlu1 %v479_v7  ;;  %377 = vset.pattern.permute.xlu0 %v478_v5 }
  0x40   :  { %124 = vperm.xlu1 %373, %v533_v2   ;;  %110 = vperm.xlu0 %377, %v545_v6  }
  0x44   :  { %375 = vset.pattern.permute.xlu1 %v475_v0  ;;  %380 = vset.pattern.permute.xlu0 %v483_v10 }
  0x45   :  { %73 = vperm.xlu1 %375, %v545_v6   ;;  %162 = vperm.xlu0 %380, %v537_v3  }
  0x49   :  { %376 = vset.pattern.permute.xlu1 %v477_v4  ;;  %382 = vset.pattern.permute.xlu0 %v484_v11 }
  0x4a   :  { %88 = vperm.xlu1 %376, %v545_v6   ;;  %273 = vperm.xlu0 %382, %v537_v3  }
  0x4e   :  { %378 = vset.pattern.permute.xlu1 %v479_v7  ;;  %384 = vset.pattern.permute.xlu0 %v485_v12 }
  0x4f   :  { %132 = vperm.xlu1 %378, %v545_v6  }
  0x53   :  { %379 = vset.pattern.permute.xlu1 %v483_v10 }
  0x54   :  { %158 = vperm.xlu1 %379, %v533_v2  }
  0x58   :  { %166 = vperm.xlu1 %379, %v545_v6  }
  0x5c   :  { %381 = vset.pattern.permute.xlu1 %v484_v11 }
  0x5d   :  { %269 = vperm.xlu1 %381, %v533_v2  }
  0x61   :  { %277 = vperm.xlu1 %381, %v545_v6  }
  0x65   :  { %383 = vset.pattern.permute.xlu1 %v485_v12 }
  0x66   :  { %294 = vperm.xlu1 %383, %v291_v13  }
  0xa7   :  { %v66_v15 = vpop.permute.xlu1 %65  ;;  %v45_v16 = vpop.permute.xlu0 %44 }
  0xa8   :  { %v61_v37 = vmul.f32 %v60_v26, %v45_v16 }
  0xaa   :  { %v76_v44 = vadd.f32 %v66_v15, %v61_v37 }
  0xab   :  { %v70_v18 = vpop.permute.xlu1 %69  ;;  %v50_v19 = vpop.permute.xlu0 %49 }
  0xac   :  { %v62_v28 = vmul.f32 %v60_v26, %v50_v19 }
  0xae   :  { %v77_v34 = vadd.f32 %v70_v18, %v62_v28 }
  0xb0   :  { %v85_v24 = vpop.permute.xlu1 %84  ;;  %v81_v25 = vpop.permute.xlu0 %80 }
  0xb1   :  { %v96_v31 = vmul.f32 %v94_v27, %v85_v24  ;;  %v95_v39 = vmul.f32 %v94_v27, %v81_v25 }
  0xb3   :  { %v99_v38 = vadd.f32 %v96_v31, %v77_v34  ;;  %v98_v47 = vadd.f32 %v95_v39, %v76_v44 }
  0xb5   :  { %v103_v32 = vpop.permute.xlu1 %102  ;;  %v107_v33 = vpop.permute.xlu0 %106 }
  0xb6   :  { %v118_v35 = vmul.f32 %v116_v29, %v107_v33  ;;  %v117_v45 = vmul.f32 %v116_v29, %v103_v32 }
  0xb8   :  { %v121_v42 = vadd.f32 %v118_v35, %v99_v38  ;;  %v120_v50 = vadd.f32 %v117_v45, %v98_v47 }
  0xba   :  { %v55_v40 = vpop.permute.xlu1 %54  ;;  %v129_v41 = vpop.permute.xlu0 %128 }
  0xbb   :  { %v140_v43 = vmul.f32 %v138_v36, %v129_v41  ;;  %v63_v56 = vmul.f32 %v60_v26, %v55_v40 }
  0xbd   :  { %v143_v46 = vadd.f32 %v140_v43, %v121_v42 }
  0xbf   :  { %v146_v48 = vmul.f32 0.5, %v143_v46  ;;  %v125_v49 = vpop.permute.xlu1 %124  ;;  %v111_v55 = vpop.permute.xlu0 %110 }
  0xc0   :  { %v139_v51 = vmul.f32 %v138_v36, %v125_v49  ;;  %v119_v60 = vmul.f32 %v116_v29, %v111_v55 }
  0xc1   :  { %385 = vtanh.f32 %v146_v48 }
  0xc2   :  { %v142_v52 = vadd.f32 %v139_v51, %v120_v50 }
  0xc4   :  { %v145_v53 = vmul.f32 0.5, %v142_v52  ;;  %v74_v54 = vpop.permute.xlu1 %73  ;;  %v163_v18 = vpop.permute.xlu0 %162 }
  0xc5   :  { %v78_v58 = vadd.f32 %v74_v54, %v63_v56 }
  0xc6   :  { %387 = vtanh.f32 %v145_v53 }
  0xc9   :  { %v89_v57 = vpop.permute.xlu1 %88  ;;  %v274_v34 = vpop.permute.xlu0 %273 }
  0xca   :  { %v97_v59 = vmul.f32 %v94_v27, %v89_v57 }
  0xcb   :  { %v386_v61 = vpop.eup %385 }
  0xcc   :  { %v100_v62 = vadd.f32 %v97_v59, %v78_v58  ;;  %v152_v4 = vmul.f32 0.5, %v386_v61 }
  0xce   :  { %v122_v63 = vadd.f32 %v119_v60, %v100_v62  ;;  %v133_v0 = vpop.permute.xlu1 %132  ;;  %v155_v12 = vadd.f32 0.5, %v152_v4 }
  0xcf   :  { %v141_v1 = vmul.f32 %v138_v36, %v133_v0 }
  0xd0   :  { %v388_v5 = vpop.eup %387 }
  0xd1   :  { %v144_v7 = vadd.f32 %v141_v1, %v122_v63  ;;  %v151_v8 = vmul.f32 0.5, %v388_v5 }
  0xd3   :  { %v147_v10 = vmul.f32 0.5, %v144_v7  ;;  %v154_v11 = vadd.f32 0.5, %v151_v8  ;;  %v159_v17 = vpop.permute.xlu1 %158 }
  0xd5   :  { %389 = vtanh.f32 %v147_v10  ;;  %v344_v13 = vpack.c.bf16 %v155_v12, %v154_v11 }
  0xd7   :  { %345 = vmatpush3.bf16.msra.mxu0 %v344_v13  ;;  %348 = vmatpush3.bf16.msra.mxu1 %v344_v13  ;;  %v167_v27 = vpop.permute.xlu1 %166 }
  0xd8   :  { %332 = vmatprep.subr.mxu0 %v482_v9  ;;  %347 = vmatprep.subr.mxu1 %v482_v9 }
  0xdc   :  { %v270_v31 = vpop.permute.xlu1 %269 }
  0xdf   :  { %v390_v14 = vpop.eup %389 }
  0xe0   :  { %v153_v15 = vmul.f32 0.5, %v390_v14  ;;  %v278_v41 = vpop.permute.xlu1 %277 }
  0xe2   :  { %v156_v16 = vadd.f32 0.5, %v153_v15 }
  0xe4   :  { %333 = vmatpush3.msra.mxu0 %v156_v16  ;;  %349 = vmatpush3.msra.mxu1 %v156_v16 }
  0xe5   :  { %335 = vmatmul.mubr.msk.f32.vlgmr.msra.gmra.mrb[0].mxu0 %vm169_vm1, %v533_v2  ;;  %338 = vmatmul.mubr.msk.f32.vlgmr.msra.gmra.mrb[0].mxu1 %vm169_vm1, %v537_v3  ;;  %v295_v50 = vpop.permute.xlu1 %294 }
  0xe6   :  { %340 = vmatprep.mubr.msk.f32.mxu1 %vm481_vm0, %v482_v9 }
  0xe9   :  { %341 = vmatmul.mubr.msk.f32.gmra.mrb[2].mxu1 %vm169_vm1, %v545_v6 }
 0x1b8   :  { %v242_v19 = vpop.f32.mrb[0].mxu0  ;;  %v247_v20 = vpop.f32.mrb[0].mxu1 }
 0x1b9   :  { %v243_v21 = vadd.f32 %v242_v19, %v159_v17  ;;  %v248_v22 = vadd.f32 %v247_v20, %v163_v18  ;;  %v339_v23 = vpop.f32.mrb[1].mxu1  ;;  %v336_v24 = vpop.f32.mrb[1].mxu0 }
 0x1bb   :  { %v256_v25 = vmul.f32 0.5, %v243_v21  ;;  %v257_v26 = vmul.f32 0.5, %v248_v22 }
 0x1bc   :  { %v252_v28 = vpop.f32.mrb[2].mxu1 }
 0x1bd   :  { %391 = vtanh.f32 %v256_v25  ;;  %v253_v2 = vadd.f32 %v252_v28, %v167_v27  ;;  %v342_v3 = vpop.f32.mrb[3].mxu1 }
 0x1be   :  { %393 = vtanh.f32 %v257_v26 }
 0x1bf   :  { %v258_v29 = vmul.f32 0.5, %v253_v2 }
 0x1c1   :  { %395 = vtanh.f32 %v258_v29 }
 0x1c7   :  { %v392_v9 = vpop.eup %391 }
 0x1c8   :  { %v394_v6 = vpop.eup %393  ;;  %v262_v30 = vmul.f32 0.5, %v392_v9 }
 0x1c9   :  { %v263_v32 = vmul.f32 0.5, %v394_v6 }
 0x1ca   :  { %v265_v33 = vadd.f32 0.5, %v262_v30 }
 0x1cb   :  { %v396_v35 = vpop.eup %395  ;;  %v266_v36 = vadd.f32 0.5, %v263_v32 }
 0x1cc   :  { %v280_v37 = vmul.f32 %v270_v31, %v265_v33  ;;  %v264_v38 = vmul.f32 0.5, %v396_v35 }
 0x1cd   :  { %v281_v39 = vmul.f32 %v274_v34, %v266_v36 }
 0x1ce   :  { %v267_v40 = vadd.f32 0.5, %v264_v38 }
 0x1cf   :  { %v283_v42 = vadd.f32 %v281_v39, %v280_v37 }
 0x1d0   :  { %v282_v43 = vmul.f32 %v278_v41, %v267_v40 }
 0x1d2   :  { %v284_v44 = vadd.f32 %v283_v42, %v282_v43 }
 0x1d4   :  { %v285_v45 = vrot.slane %v284_v44, 4 }
 0x1d6   :  { %v286_v46 = vadd.f32 %v285_v45, %v284_v44 }
 0x1d8   :  { %v287_v47 = vrot.slane %v286_v46, 2 }
 0x1da   :  { %v288_v48 = vadd.f32 %v287_v47, %v286_v46 }
 0x1dc   :  { %v289_v49 = vrot.slane %v288_v48, 1 }
 0x1de   :  { %v290_v51 = vadd.f32 %v289_v49, %v288_v48 }
 0x1e0   :  { %v297_v52 = vadd.f32 %v295_v50, %v290_v51 }
 0x1e2   :  { %v298_v53 = vmul.f32 0.5, %v297_v52 }
 0x1e4   :  { %397 = vtanh.f32 %v298_v53 }
 0x1ee   :  { %v398_v54 = vpop.eup %397 }
 0x1ef   :  { %v300_v55 = vmul.f32 0.5, %v398_v54 }
 0x1f1   :  { %v301_v56 = vadd.f32 0.5, %v300_v55 }
 0x1f3   :  { %302 = vst [vmem:[#allocation7] sm:$0x1] %v301_v56 }
 0x1f4   :  { %454 = shalt.err (!%p451_p6)
}
 0x1f5   :  { %s455_s11 = scalar_lea.hbm %s585_s2, 16 }
 0x1f6   :  { %p456_p7 = scmp.ne.s32.totalorder %s585_s2, %s455_s11  ;;  %p459_p8 = scmp.lt.u32.totalorder %s455_s11, %s585_s2 }
 0x1f8   :  { %p461_p9 = pnand %p459_p8, %p456_p7 }
 0x1fa   :  { %464 = shalt.err (!%p461_p9)
}
 0x1fb   :  { %312 = dma.vmem_to_hbm [thread:$0]  %s310_s6, 16, %s585_s2, [#allocation4]  }
 0x1fc   :  { %469 = dma.done.wait [#allocation4], 16  }
 0x1fd   :  { %470 = vsyncadd [#allocation4], 4294967280 }
 0x1fe   :  { %316 = vsyncpa [#allocation3], 1 }
 0x1ff   :  { %317 = vsyncpa [#allocation6], 1 }
 0x200   :  { %318 = vsyncpa [#allocation4], 1 }

</bundles_post_ra>
